<compile_context>
chip_gen: v7x
topology: tpu7x:2x2x1
jax: 0.10.0
libtpu: 0.0.40
codegen_flags: <defaults>
</compile_context>

<pallas_src>
import functools
import math

import jax
import jax.numpy as jnp
from jax import lax
from jax.experimental import pallas as pl
from jax.experimental.pallas import tpu as pltpu


# ---------------------------------------------------------------------------
# Generation-aware VMEM budget and tiling helpers
# ---------------------------------------------------------------------------
@functools.lru_cache(maxsize=1)
def _vmem_limit_bytes():
    """v5e/v6e have 128 MiB VMEM per TensorCore, v7x has 64 MiB; leave headroom."""
    try:
        kind = jax.devices()[0].device_kind.lower()
    except Exception:
        kind = ""
    if "v7" in kind:
        return 48 * 1024 * 1024     # headroom out of v7x's 64 MiB/TC
    if "tpu" in kind or "v5" in kind or "v6" in kind:
        return 100 * 1024 * 1024    # 128 MiB parts: allow larger tiles
    return 48 * 1024 * 1024         # unknown backend: conservative


def _sublane_min(dtype):
    # Packed-tile minimum on the sublane axis: 8 (f32) / 16 (bf16) / 32 (int8).
    return max(8, 32 // jnp.dtype(dtype).itemsize)


def _pick_tile(dim, candidates):
    """Largest candidate that evenly divides `dim`, else the full dim (always legal)."""
    for c in candidates:
        if c <= dim and dim % c == 0:
            return c
    return dim


def _compute_dtype(dtype):
    # MXU is bf16-native on v5e/v6e/v7x; accumulate in f32.
    return jnp.bfloat16 if jnp.dtype(dtype) == jnp.float32 else jnp.dtype(dtype)


def _head_group(num_heads, head_dim):
    """Smallest divisor G of H with G*D a multiple of 128 (lane-dense E blocks);
    fall back to all heads (G*D == E is a full-extent block, always legal)."""
    for g in range(1, num_heads + 1):
        if num_heads % g == 0 and (g * head_dim) % 128 == 0:
            return g
    return num_heads


# ---------------------------------------------------------------------------
# Tiled linear kernel: y = x @ W + b   (W stored pre-transposed as (in, out))
# ---------------------------------------------------------------------------
def _linear_kernel(x_ref, w_ref, b_ref, o_ref, acc_ref, *, compute_dtype):
    k = pl.program_id(2)

    @pl.when(k == 0)
    def _init():
        acc_ref[...] = jnp.zeros_like(acc_ref)

    # bf16 operands feed the MXU at native rate; f32 accumulation in VMEM scratch.
    acc_ref[...] += jnp.dot(x_ref[...].astype(compute_dtype),
                            w_ref[...].astype(compute_dtype),
                            preferred_element_type=jnp.float32)

    @pl.when(k == pl.num_programs(2) - 1)
    def _finalize():
        o_ref[...] = (acc_ref[...] + b_ref[...].astype(jnp.float32)).astype(o_ref.dtype)


def pallas_linear(x2d, w, b):
    """x2d: (M, K), w: (K, N), b: (N,) -> (M, N)."""
    M, K = x2d.shape
    N = w.shape[1]
    big = _vmem_limit_bytes() >= 96 * 1024 * 1024   # bigger output tiles on 128 MiB parts
    sub = _sublane_min(x2d.dtype)
    tm = _pick_tile(M, (512, 256, 128, sub) if big else (256, 128, sub))
    tn = _pick_tile(N, (512, 256, 128) if big else (256, 128))
    tk = _pick_tile(K, (512, 256, 128))
    grid = (M // tm, N // tn, K // tk)
    itm = int(jnp.dtype(x2d.dtype).itemsize)
    cost = pl.CostEstimate(
        flops=int(2 * M * N * K),
        transcendentals=0,
        bytes_accessed=int((M * K + K * N + N + M * N) * itm),
    )
    kernel = functools.partial(_linear_kernel, compute_dtype=_compute_dtype(x2d.dtype))
    return pl.pallas_call(
        kernel,
        out_shape=jax.ShapeDtypeStruct((M, N), x2d.dtype),
        grid=grid,
        in_specs=[
            pl.BlockSpec((tm, tk), lambda i, j, k: (i, k)),
            pl.BlockSpec((tk, tn), lambda i, j, k: (k, j)),
            pl.BlockSpec((1, tn), lambda i, j, k: (0, j)),
        ],
        out_specs=pl.BlockSpec((tm, tn), lambda i, j, k: (i, j)),
        scratch_shapes=[pltpu.VMEM((tm, tn), jnp.float32)],
        compiler_params=pltpu.CompilerParams(
            dimension_semantics=("parallel", "parallel", "arbitrary"),
            vmem_limit_bytes=_vmem_limit_bytes(),
        ),
        cost_estimate=cost,
    )(x2d, w, b.reshape(1, N))


# ---------------------------------------------------------------------------
# Attention kernels.  Inputs stay in (B, S, E) projection layout; the head split is a
# static lane slice of the (tq, G*D) / (Sk, G*D) blocks.  Output is lane-dense (B, Sq, E).
# ---------------------------------------------------------------------------
def _attn_weights_kernel(q_ref, k_ref, v_ref, o_ref, w_ref, *, scale, G, D, compute_dtype):
    q = q_ref[0] * scale                       # (tq, G*D): scale folded onto the cheapest operand
    k = k_ref[0]                               # (Sk, G*D)
    v = v_ref[0]                               # (Sk, G*D)
    outs = []
    for g in range(G):                         # static unroll over heads in the group
        sl = slice(g * D, (g + 1) * D)
        qh = q[:, sl].astype(compute_dtype)
        kh = k[:, sl].astype(compute_dtype)
        vh = v[:, sl].astype(compute_dtype)
        # scores[q, s] = sum_d qh[q, d] * kh[s, d]   (contract last dims; no K transpose)
        s = lax.dot_general(qh, kh, (((1,), (1,)), ((), ())),
                            preferred_element_type=jnp.float32)         # (tq, Sk)
        m = jnp.max(s, axis=-1, keepdims=True)
        e = jnp.exp(s - m)
        l = jnp.sum(e, axis=-1, keepdims=True)
        p = e * pl.reciprocal(l)               # exact reciprocal: returned rows sum to 1
        w_ref[0, g] = p.astype(w_ref.dtype)
        outs.append(jnp.dot(p.astype(compute_dtype), vh,
                            preferred_element_type=jnp.float32))        # (tq, D)
    # Lane-dense (tq, G*D) slab of the (B, Sq, E)-laid-out output; no host-side transpose.
    o_ref[0] = jnp.concatenate(outs, axis=-1).astype(o_ref.dtype)


def _attn_flash_kernel(q_ref, k_ref, v_ref, o_ref, m_sc, l_sc, acc_sc,
                       *, scale, G, D, compute_dtype):
    kv = pl.program_id(3)

    @pl.when(kv == 0)
    def _init():
        m_sc[...] = jnp.full_like(m_sc, -jnp.inf)
        l_sc[...] = jnp.zeros_like(l_sc)
        acc_sc[...] = jnp.zeros_like(acc_sc)

    q = q_ref[0] * scale                       # (tq, G*D)
    k = k_ref[0]                               # (tkv, G*D)
    v = v_ref[0]
    for g in range(G):
        sl = slice(g * D, (g + 1) * D)
        qh = q[:, sl].astype(compute_dtype)
        kh = k[:, sl].astype(compute_dtype)
        vh = v[:, sl].astype(compute_dtype)
        s = lax.dot_general(qh, kh, (((1,), (1,)), ((), ())),
                            preferred_element_type=jnp.float32)         # (tq, tkv)
        m_prev = m_sc[g]
        m_new = jnp.maximum(m_prev, jnp.max(s, axis=-1, keepdims=True))
        alpha = jnp.exp(m_prev - m_new)
        p = jnp.exp(s - m_new)
        l_sc[g] = alpha * l_sc[g] + jnp.sum(p, axis=-1, keepdims=True)
        acc_sc[g] = alpha * acc_sc[g] + jnp.dot(p.astype(compute_dtype), vh,
                                                preferred_element_type=jnp.float32)
        m_sc[g] = m_new

    @pl.when(kv == pl.num_programs(3) - 1)
    def _finalize():
        outs = [acc_sc[g] * pl.reciprocal(l_sc[g], approx=True) for g in range(G)]
        o_ref[0] = jnp.concatenate(outs, axis=-1).astype(o_ref.dtype)


def pallas_attention(q, k, v, num_heads, need_weights=True):
    """q: (B, Sq, E), k/v: (B, Sk, E) in projection layout (no head transposes).

    Returns (output (B, Sq, E), attn_weights (B, H, Sq, Sk) or None)."""
    B, Sq, E = q.shape
    Sk = k.shape[1]
    H = num_heads
    D = E // H
    G = _head_group(H, D)
    GD = G * D
    scale = 1.0 / math.sqrt(float(D))
    cdt = _compute_dtype(q.dtype)
    limit = _vmem_limit_bytes()
    itm = int(jnp.dtype(q.dtype).itemsize)
    sub = _sublane_min(q.dtype)

    if need_weights:
        w_dtype = q.dtype                      # input dtype, not forced f32 (halves writeback for bf16)
        itw = int(jnp.dtype(w_dtype).itemsize)
        # Size tq against the double-buffered per-step VMEM footprint (weights block dominates).
        budget = int(limit * 0.6)
        tq = None
        for c in (512, 256, 128, 64, 32, 16, 8):
            if c < sub or Sq % c:
                continue
            tq = c
            per_step = 2 * ((2 * c * GD + 2 * Sk * GD) * itm + G * c * Sk * itw)
            if per_step <= budget:
                break
        if tq is None:
            tq = Sq
        grid = (B, H // G, Sq // tq)
        cost = pl.CostEstimate(
            flops=int(4 * B * H * Sq * Sk * D),
            transcendentals=int(B * H * Sq * Sk),
            bytes_accessed=int((2 * B * Sq * E + 2 * B * Sk * E) * itm + B * H * Sq * Sk * itw),
        )
        kernel = functools.partial(_attn_weights_kernel, scale=scale, G=G, D=D,
                                   compute_dtype=cdt)
        out, weights = pl.pallas_call(
            kernel,
            out_shape=(
                jax.ShapeDtypeStruct((B, Sq, E), q.dtype),
                jax.ShapeDtypeStruct((B, H, Sq, Sk), w_dtype),
            ),
            grid=grid,
            in_specs=[
                pl.BlockSpec((1, tq, GD), lambda b, hg, qb: (b, qb, hg)),
                pl.BlockSpec((1, Sk, GD), lambda b, hg, qb: (b, 0, hg)),
                pl.BlockSpec((1, Sk, GD), lambda b, hg, qb: (b, 0, hg)),
            ],
            out_specs=(
                pl.BlockSpec((1, tq, GD), lambda b, hg, qb: (b, qb, hg)),
                pl.BlockSpec((1, G, tq, Sk), lambda b, hg, qb: (b, hg, qb, 0)),
            ),
            compiler_params=pltpu.CompilerParams(
                dimension_semantics=("parallel", "parallel", "parallel"),
                vmem_limit_bytes=limit,
            ),
            cost_estimate=cost,
        )(q, k, v)
        return out, weights

    # need_weights=False: KV-tiled online-softmax (flash) path; no (B,H,Sq,Sk) writeback.
    tq = _pick_tile(Sq, (256, 128, sub))
    tkv = _pick_tile(Sk, (512, 256, 128))
    grid = (B, H // G, Sq // tq, Sk // tkv)
    cost = pl.CostEstimate(
        flops=int(4 * B * H * Sq * Sk * D),
        transcendentals=int(B * H * Sq * Sk),
        bytes_accessed=int((2 * B * Sq * E + 2 * B * Sk * E) * itm),
    )
    kernel = functools.partial(_attn_flash_kernel, scale=scale, G=G, D=D, compute_dtype=cdt)
    out = pl.pallas_call(
        kernel,
        out_shape=jax.ShapeDtypeStruct((B, Sq, E), q.dtype),
        grid=grid,
        in_specs=[
            pl.BlockSpec((1, tq, GD), lambda b, hg, qb, kv: (b, qb, hg)),
            pl.BlockSpec((1, tkv, GD), lambda b, hg, qb, kv: (b, kv, hg)),
            pl.BlockSpec((1, tkv, GD), lambda b, hg, qb, kv: (b, kv, hg)),
        ],
        out_specs=pl.BlockSpec((1, tq, GD), lambda b, hg, qb, kv: (b, qb, hg)),
        scratch_shapes=[
            pltpu.VMEM((G, tq, 1), jnp.float32),   # running max
            pltpu.VMEM((G, tq, 1), jnp.float32),   # running denom
            pltpu.VMEM((G, tq, D), jnp.float32),   # output accumulator
        ],
        compiler_params=pltpu.CompilerParams(
            dimension_semantics=("parallel", "parallel", "parallel", "arbitrary"),
            vmem_limit_bytes=limit,
        ),
        cost_estimate=cost,
    )(q, k, v)
    return out, None


# ---------------------------------------------------------------------------
# MultiHeadAttention wrapper (parameter setup + free reshapes in plain JAX)
# ---------------------------------------------------------------------------
def init_mha_params(key, embed_dim):
    """Deterministic parameter init (Kaiming-uniform-ish like nn.Linear)."""
    ks = jax.random.split(key, 8)
    bound = 1.0 / math.sqrt(embed_dim)

    def lin(kw, kb):
        w = jax.random.uniform(kw, (embed_dim, embed_dim), jnp.float32, -bound, bound)
        b = jax.random.uniform(kb, (embed_dim,), jnp.float32, -bound, bound)
        return w, b   # stored pre-transposed as (in, out)

    wq, bq = lin(ks[0], ks[1])
    wk, bk = lin(ks[2], ks[3])
    wv, bv = lin(ks[4], ks[5])
    wo, bo = lin(ks[6], ks[7])
    return dict(
        wq=wq, bq=bq, wk=wk, bk=bk, wv=wv, bv=bv, wo=wo, bo=bo,
        # fused (E, 3E) weight / (3E,) bias for the self-attention fast path
        w_qkv=jnp.concatenate([wq, wk, wv], axis=1),
        b_qkv=jnp.concatenate([bq, bk, bv], axis=0),
    )


def multi_head_attention(params, query, key, value, num_heads, need_weights=True):
    """Eval-mode forward.  Returns (output (B,Sq,E), attn_weights (B,H,Sq,Sk) or None)."""
    B, Sq, E = query.shape
    Sk = key.shape[1]

    if (query is key) and (key is value):
        # Self-attention: one fused QKV matmul (activation read from HBM once).
        qkv = pallas_linear(query.reshape(B * Sq, E), params["w_qkv"], params["b_qkv"])
        q3 = qkv[:, :E].reshape(B, Sq, E)
        k3 = qkv[:, E:2 * E].reshape(B, Sq, E)
        v3 = qkv[:, 2 * E:].reshape(B, Sq, E)
    else:
        q3 = pallas_linear(query.reshape(B * Sq, E), params["wq"], params["bq"]).reshape(B, Sq, E)
        k3 = pallas_linear(key.reshape(B * Sk, E), params["wk"], params["bk"]).reshape(B, Sk, E)
        v3 = pallas_linear(value.reshape(B * Sk, E), params["wv"], params["bv"]).reshape(B, Sk, E)

    # Head split is folded into the attention BlockSpecs; no (B,S,H,D)->(B,H,S,D) transposes.
    attn_out, attn_weights = pallas_attention(q3, k3, v3, num_heads, need_weights)

    # TODO(synk): dropout on attention weights / output not implemented (eval-mode identity).
    # TODO(synk): optional attention mask not implemented (mask=None path only).
    # Output projection: attention output is already (B, Sq, E), so this is a plain
    # deep-contraction matmul (tk up to 512) rather than a head_dim-deep reduction.
    out = pallas_linear(attn_out.reshape(B * Sq, E), params["wo"], params["bo"]).reshape(B, Sq, E)
    return out, attn_weights


# ---------------------------------------------------------------------------
# Pure-JAX reference for a correctness sanity check
# ---------------------------------------------------------------------------
def _reference_mha(params, query, key, value, num_heads):
    B, Sq, E = query.shape
    Sk = key.shape[1]
    D = E // num_heads

    def lin(x, w, b):
        return jnp.dot(x, w, precision="highest") + b

    q = lin(query, params["wq"], params["bq"]).reshape(B, Sq, num_heads, D).transpose(0, 2, 1, 3)
    k = lin(key, params["wk"], params["bk"]).reshape(B, Sk, num_heads, D).transpose(0, 2, 1, 3)
    v = lin(value, params["wv"], params["bv"]).reshape(B, Sk, num_heads, D).transpose(0, 2, 1, 3)
    scores = jnp.einsum("bhqd,bhkd->bhqk", q, k, precision="highest") / math.sqrt(D)
    w_ = jax.nn.softmax(scores, axis=-1)
    o = jnp.einsum("bhqk,bhkd->bhqd", w_, v, precision="highest")
    o = o.transpose(0, 2, 1, 3).reshape(B, Sq, E)
    out = jnp.dot(o, params["wo"], precision="highest") + params["bo"]
    return out, w_


# ---------------------------------------------------------------------------
if __name__ == "__main__":
    B, S, E, H = 2, 8, 32, 4   # batch, seq, embed_dim, num_heads (head_dim = 8)

    root = jax.random.PRNGKey(0)
    kp, kx, kq, kk, kv = jax.random.split(root, 5)

    params = init_mha_params(kp, E)

    # Self-attention (fused QKV projection) with weights, and the flash (no-weights) path.
    x = jax.random.normal(kx, (B, S, E), jnp.float32)
    out_sa, attn_sa = multi_head_attention(params, x, x, x, H)
    out_fl, attn_none = multi_head_attention(params, x, x, x, H, need_weights=False)

    # Cross-attention path (separate Q/K/V projections).
    query = jax.random.normal(kq, (B, S, E), jnp.float32)
    key = jax.random.normal(kk, (B, S, E), jnp.float32)
    value = jax.random.normal(kv, (B, S, E), jnp.float32)
    out_ca, attn_ca = multi_head_attention(params, query, key, value, H)

    jax.block_until_ready((out_sa, attn_sa, out_fl, out_ca, attn_ca))

    assert out_sa.shape == (B, S, E) and attn_sa.shape == (B, H, S, S)
    assert out_ca.shape == (B, S, E) and attn_ca.shape == (B, H, S, S)
    assert attn_none is None and out_fl.shape == (B, S, E)

    ref_out_sa, ref_attn_sa = _reference_mha(params, x, x, x, H)
    ref_out_ca, ref_attn_ca = _reference_mha(params, query, key, value, H)
    assert jnp.allclose(out_sa, ref_out_sa, atol=2e-2, rtol=2e-2)
    assert jnp.allclose(attn_sa, ref_attn_sa, atol=2e-2, rtol=2e-2)
    assert jnp.allclose(out_fl, ref_out_sa, atol=2e-2, rtol=2e-2)
    assert jnp.allclose(out_ca, ref_out_ca, atol=2e-2, rtol=2e-2)
    assert jnp.allclose(attn_ca, ref_attn_ca, atol=2e-2, rtol=2e-2)

    print("KERNEL_OK")
</pallas_src>

<mosaic_0001>
module attributes {stable_mosaic.version = 11 : i64} {
  func.func @_linear_kernel(%arg0: i32, %arg1: i32, %arg2: i32, %arg3: memref<8x32xf32, #tpu.memory_space<vmem>>, %arg4: memref<32x96xf32, #tpu.memory_space<vmem>>, %arg5: memref<1x96xf32, #tpu.memory_space<vmem>>, %arg6: memref<8x96xf32, #tpu.memory_space<vmem>>, %arg7: memref<8x96xf32, #tpu.memory_space<vmem>>) attributes {dimension_semantics = [#tpu.dimension_semantics<parallel>, #tpu.dimension_semantics<parallel>, #tpu.dimension_semantics<arbitrary>], iteration_bounds = array<i64: 2, 1, 1>, scalar_prefetch = 0 : i64, scratch_operands = 1 : i64, tpu.core_type = #tpu.core_type<tc>, window_params = [{transform_indices = @transform_0, window_bounds = array<i64: 8, 32>}, {transform_indices = @transform_1, window_bounds = array<i64: 32, 96>}, {transform_indices = @transform_2, window_bounds = array<i64: 1, 96>}, {transform_indices = @transform_3, window_bounds = array<i64: 8, 96>}]} {
    %c0_i32 = arith.constant 0 : i32
    %0 = arith.cmpi eq, %arg2, %c0_i32 : i32
    %1 = arith.extui %0 : i1 to i32
    %c0_i32_0 = arith.constant 0 : i32
    %2 = arith.cmpi ne, %1, %c0_i32_0 : i32
    scf.if %2 {
      %cst_10 = arith.constant 0.000000e+00 : f32
      %14 = vector.broadcast %cst_10 : f32 to vector<8x96xf32>
      %c0_11 = arith.constant 0 : index
      %c0_12 = arith.constant 0 : index
      %15 = vector.load %arg7[%c0_11, %c0_12] : memref<8x96xf32, #tpu.memory_space<vmem>>, vector<8x96xf32>
      tpu.vector_store %arg7[%c0_11, %c0_12], %14 {strides = array<i32>} : memref<8x96xf32, #tpu.memory_space<vmem>>, vector<8x96xf32>,
    } else {
    }
    %c0 = arith.constant 0 : index
    %c0_1 = arith.constant 0 : index
    %3 = vector.load %arg7[%c0, %c0_1] : memref<8x96xf32, #tpu.memory_space<vmem>>, vector<8x96xf32>
    %c0_2 = arith.constant 0 : index
    %c0_3 = arith.constant 0 : index
    %4 = vector.load %arg3[%c0_2, %c0_3] : memref<8x32xf32, #tpu.memory_space<vmem>>, vector<8x32xf32>
    %5 = arith.truncf %4 : vector<8x32xf32> to vector<8x32xbf16>
    %c0_4 = arith.constant 0 : index
    %c0_5 = arith.constant 0 : index
    %6 = vector.load %arg4[%c0_4, %c0_5] : memref<32x96xf32, #tpu.memory_space<vmem>>, vector<32x96xf32>
    %7 = arith.truncf %6 : vector<32x96xf32> to vector<32x96xbf16>
    %cst = arith.constant dense<0.000000e+00> : vector<8x96xf32>
    %8 = tpu.matmul %5, %7, %cst {dimension_numbers = #tpu.dot_dimension_numbers<[1], [0], [0], [1], [0, 0, 1, 1], [], []>} : vector<8x32xbf16>, vector<32x96xbf16>, vector<8x96xf32> -> vector<8x96xf32>
    %9 = arith.addf %3, %8 : vector<8x96xf32>
    %c0_6 = arith.constant 0 : index
    %c0_7 = arith.constant 0 : index
    %10 = vector.load %arg7[%c0_6, %c0_7] : memref<8x96xf32, #tpu.memory_space<vmem>>, vector<8x96xf32>
    tpu.vector_store %arg7[%c0_6, %c0_7], %9 {strides = array<i32>} : memref<8x96xf32, #tpu.memory_space<vmem>>, vector<8x96xf32>,
    %c0_i32_8 = arith.constant 0 : i32
    %11 = arith.cmpi eq, %arg2, %c0_i32_8 : i32
    %12 = arith.extui %11 : i1 to i32
    %c0_i32_9 = arith.constant 0 : i32
    %13 = arith.cmpi ne, %12, %c0_i32_9 : i32
    scf.if %13 {
      %c0_10 = arith.constant 0 : index
      %c0_11 = arith.constant 0 : index
      %14 = vector.load %arg7[%c0_10, %c0_11] : memref<8x96xf32, #tpu.memory_space<vmem>>, vector<8x96xf32>
      %c0_12 = arith.constant 0 : index
      %c0_13 = arith.constant 0 : index
      %15 = vector.load %arg5[%c0_12, %c0_13] : memref<1x96xf32, #tpu.memory_space<vmem>>, vector<1x96xf32>
      %16 = vector.broadcast %15 : vector<1x96xf32> to vector<8x96xf32>
      %17 = arith.addf %14, %16 : vector<8x96xf32>
      %c0_14 = arith.constant 0 : index
      %c0_15 = arith.constant 0 : index
      %18 = vector.load %arg6[%c0_14, %c0_15] : memref<8x96xf32, #tpu.memory_space<vmem>>, vector<8x96xf32>
      tpu.vector_store %arg6[%c0_14, %c0_15], %17 {strides = array<i32>} : memref<8x96xf32, #tpu.memory_space<vmem>>, vector<8x96xf32>,
    } else {
    }
    return
  }
  func.func @transform_0(%arg0: i32, %arg1: i32, %arg2: i32) -> (i32, i32) {
    %c0_i32 = arith.constant 0 : i32
    return %arg0, %arg2 : i32, i32
  }
  func.func @transform_1(%arg0: i32, %arg1: i32, %arg2: i32) -> (i32, i32) {
    %c0_i32 = arith.constant 0 : i32
    return %arg2, %arg1 : i32, i32
  }
  func.func @transform_2(%arg0: i32, %arg1: i32, %arg2: i32) -> (i32, i32) {
    %c0_i32 = arith.constant 0 : i32
    %c0_i32_0 = arith.constant 0 : i32
    return %c0_i32, %arg1 : i32, i32
  }
  func.func @transform_3(%arg0: i32, %arg1: i32, %arg2: i32) -> (i32, i32) {
    %c0_i32 = arith.constant 0 : i32
    return %arg0, %arg1 : i32, i32
  }
}

</mosaic_0001>

<bundles_post_ra>
// kernel: tpu_custom_call.1
= control target key start
LH: loop header
LB: loop body
LE: loop exit
PB: predicated region body
PF: predicated region fallthrough
CT: control target
= control target key end

     0   :  { %8 = vsyncpa [#allocation4], 0  ;;  %s954_s0 = inlined_call_operand.hbm [shape: f32[16,32], index: 0, kind: input, shape index: {}]   ;;  %s955_s1 = inlined_call_operand.hbm [shape: f32[32,96], index: 1, kind: input, shape index: {}]   ;;  %s956_s2 = inlined_call_operand.vmem [shape: f32[1,96], index: 2, kind: input, shape index: {}]   ;;  %s957_s3 = inlined_call_operand.hbm [shape: f32[16,96], index: 3, kind: output, shape index: {}]  }
   0x1   :  { %10 = vsyncpa [#allocation4 + $0x1], 0 }
   0x2   :  { %11 = vsyncpa [#allocation7], 0 }
   0x3   :  { %12 = vsyncpa [#allocation5], 0 }
   0x4   :  { %14 = vsyncpa [#allocation5 + $0x1], 0  ;;  %s730_s12 = smov 0   ;;  %s732_s13 = smov 0  }
   0x5   :  { %s734_s14 = smov 0   ;;  %s736_s15 = smov 0  }
   0x6   :  { %s738_s16 = smov 0   ;;  %s740_s17 = smov 0  }
   0x7 LB: > { %s451_s18 = sadd.s32 4294967295, %s701_s17   ;;  %s452_s19 = sadd.s32 4294967294, %s701_s17   ;;  %s701_s17 = sphi %s740_s17, %s20_s17   ;;  %s697_s16 = sphi %s738_s16, %s981_s16   ;;  %s693_s15 = sphi %s736_s15, %s980_s15   ;;  %s689_s14 = sphi %s734_s14, %s979_s14   ;;  %s685_s13 = sphi %s732_s13, %s978_s13   ;;  %s681_s12 = sphi %s730_s12, %s977_s12  }
   0x8   : > { %p61_p0 = scmp.ne.s32.totalorder %s685_s13, %s681_s12  ;;  %p764_p1 = scmp.eq.s32.totalorder %s451_s18, 0 }
   0x9   : > { %p768_p2 = scmp.eq.s32.totalorder %s451_s18, 1  ;;  %p147_p3 = scmp.eq.s32.totalorder %s452_s19, 1 }
   0xa   : > { %s962_s20 = scalar_select %p764_p1, 1, 0 }
   0xb   : > { %s963_s21 = scalar_select %p768_p2, 1, 0 }
   0xc   : > { %p774_p4 = por %p764_p1, %p61_p0  ;;  %p453_p5 = scmp.ge.s32.totalorder %s701_s17, 1 }
   0xd   : > { %p779_p6 = por %p147_p3, %p61_p0  ;;  %p154_p7 = scmp.lt.s32.totalorder %s701_s17, 3 }
   0xe   : > { %s964_s22 = scalar_select %p774_p4, 1, 0 }
   0xf   : > { %s965_s23 = scalar_select %p779_p6, 1, 0 }
  0x10   : > { %p784_p8 = pnand %p453_p5, %p154_p7  ;;  %s703_s25 = smov [#allocation6]  }
  0x11   : > { %s170_s26 = sshll.u32 %s703_s25, 4  ;;  %s39_s28 = sadd.s32 1, %s697_s16  ;;  %s171_s26 = int_to_ptr.vmem [resolvable:$true] %s170_s26 }
  0x12   : > { %s966_s24 = scalar_select %p784_p8, 1, 0 }
  0x13   : > { %p488_p9 = pneg %p784_p8  ;;  %s557_s4 = scalar_lea.hbm %s955_s1, 512 }
  0x14   : > { %p558_p12 = scmp.ne.s32.totalorder %s955_s1, %s557_s4  ;;  %p564_p5 = scmp.lt.u32.totalorder %s557_s4, %s955_s1 }
  0x15   : > { %p793_p11 = pnand %p488_p9, %p764_p1 }
  0x17   : > { %p559_p13 = pneg %p793_p11 }
  0x19   : > { %p560_p0 = pnand %p559_p13, %p558_p12 }
  0x1b   : > { %p561_p3 = pneg %p560_p0 }
  0x1d   : > { %p566_p7 = pnand %p564_p5, %p561_p3 }
  0x1f   : > { %569 = shalt.err (!%p566_p7)
}
  0x20   : > { %s570_s9 = scalar_lea.vmem %s171_s26, 512  ;;  %p578_p1 = scmp.lt.s32.totalorder %s171_s26, %s171_s26 }
  0x21   : > { %p571_p9 = scmp.ne.s32.totalorder %s171_s26, %s570_s9  ;;  %p579_p4 = scmp.lt.s32.totalorder %s570_s9, %s570_s9 }
  0x23   : > { %p573_p10 = pnand %p571_p9, %p559_p13  ;;  %p580_p8 = por %p579_p4, %p578_p1 }
  0x25   : > { %p574_p6 = pneg %p573_p10 }
  0x27   : > { %p581_p2 = pnand %p580_p8, %p574_p6 }
  0x29   : > { %584 = shalt.err (!%p581_p2)
}
  0x2a   : > { %s704_s10 = smov 128   ;;  %s705_s11 = smov 8  }
  0x2b   : > { %491 = dma.hbm_to_vmem [thread:$0]  (!%p793_p11), %s955_s1, 512, %s171_s26, [#allocation7], %s704_s10, %s704_s10, %s705_s11  }
  0x2c   : > { %p41_p1 = scmp.ge.s32.totalorder %s39_s28, 2  ;;  %s48_s25 = sadd.s32 1, %s689_s14 }
  0x2d   : > { %p55_p2 = scmp.ne.s32.totalorder %s689_s14, %s685_s13  ;;  %p56_p4 = scmp.eq.s32.totalorder %s701_s17, 0 }
  0x2e   : > { %s983_s28 = smov (%p41_p1, %s39_s28), 0  ;;  %p969_p8 = scmp.ne.s32.totalorder %s963_s21, 0 }
  0x2f   : > { %p820_p6 = por %p56_p4, %p55_p2  ;;  %s43_s27 = ssub.s32 %s697_s16, %s983_s28 }
  0x30   : > { %p826_p10 = por %p969_p8, %p55_p2  ;;  %p501_p12 = scmp.lt.s32.totalorder %s701_s17, 2 }
  0x31   : > { %p46_p11 = scmp.eq.s32.totalorder %s43_s27, 0  ;;  %s190_s26 = sand.u32 1, %s689_s14  }
  0x32   : > { %s457_s4 = sshll.u32 %s190_s26, 3  ;;  %s458_s6 = sshll.u32 %s697_s16, 7 }
  0x33   : > { %s835_s5 = scalar_select %p46_p11, %s689_s14, %s48_s25  }
  0x34   : > { %s841_s9 = scalar_lea.hbm %s954_s0, %s458_s6  ;;  %s194_s21 = scalar_lea.vmem [#allocation3], %s457_s4 }
  0x35   : > { %s202_s10 = sshll.u32 %s194_s21, 4  ;;  %p847_p13 = pnand %p501_p12, %p820_p6  ;;  %s843_s10 = int_to_ptr.vmem [resolvable:$true] %s202_s10 }
  0x36   : > { %s191_s18 = scalar_lea.sflag [#allocation4], %s190_s26  ;;  %s585_s19 = scalar_lea.hbm %s841_s9, 128 }
  0x37   : > { %p586_p0 = scmp.ne.s32.totalorder %s841_s9, %s585_s19  ;;  %p587_p3 = pneg %p847_p13 }
  0x38   : > { %s590_s4 = scalar_lea.hbm %s954_s0, 256  ;;  %p591_p9 = scmp.lt.u32.totalorder %s841_s9, %s954_s0 }
  0x39   : > { %p588_p5 = pnand %p587_p3, %p586_p0  ;;  %p592_p1 = scmp.lt.u32.totalorder %s590_s4, %s585_s19 }
  0x3a   : > { %p594_p4 = scmp.lt.u32.totalorder %s585_s19, %s841_s9 }
  0x3b   : > { %p589_p7 = pneg %p588_p5  ;;  %p593_p2 = por %p592_p1, %p591_p9 }
  0x3d   : > { %p595_p6 = por %p594_p4, %p593_p2 }
  0x3f   : > { %p596_p8 = pnand %p595_p6, %p589_p7 }
  0x41   : > { %599 = shalt.err (!%p596_p8)
}
  0x42   : > { %s600_s26 = scalar_lea.vmem %s843_s10, 128  ;;  %s706_s7 = smov [#allocation3]  }
  0x43   : > { %p601_p12 = scmp.ne.s32.totalorder %s843_s10, %s600_s26  ;;  %s605_s8 = sshll.u32 %s706_s7, 4  ;;  %s606_s8 = int_to_ptr.vmem [resolvable:$false] %s605_s8 }
  0x44   : > { %s607_s21 = scalar_lea.vmem %s606_s8, 256  ;;  %p608_p5 = scmp.lt.s32.totalorder %s843_s10, %s606_s8 }
  0x45   : > { %p603_p11 = pnand %p601_p12, %p587_p3  ;;  %p609_p9 = scmp.lt.s32.totalorder %s607_s21, %s600_s26 }
  0x47   : > { %p604_p0 = pneg %p603_p11  ;;  %p610_p1 = por %p609_p9, %p608_p5 }
  0x49   : > { %p611_p2 = pnand %p610_p1, %p604_p0 }
  0x4b   : > { %614 = shalt.err (!%p611_p2)
}
  0x4c   : > { %495 = dma.hbm_to_vmem [thread:$0]  (!%p847_p13), %s841_s9, 128, %s843_s10, %s191_s18  }
  0x4d   : > { %p972_p7 = scmp.ne.s32.totalorder %s966_s24, 0 }
  0x4e   : > { %s879_s19 = sand.u32 (!%p972_p7), 1, %s685_s13   ;;  %p973_p3 = scmp.ne.s32.totalorder (!%p972_p7), %s964_s22, 0 }
  0x4f   : > { %211 = sbr.rel (%p972_p7) target bundleno = 339 (0x153), region = 32  ;;  %s460_s25 = sshll.u32 (!%p972_p7), %s879_s19, 3 }
  0x50   : > { %s214_s27 = scalar_lea.sflag (!%p972_p7), [#allocation4], %s879_s19  ;;  %s217_s4 = scalar_lea.vmem (!%p972_p7), [#allocation3], %s460_s25 }
  0x56   : > { %668 = dma.done.wait (%p973_p3), %s214_s27, 128  }
  0x57   : > { %670 = vsyncadd (%p973_p3), %s214_s27, 4294967168  ;;  %p974_p13 = scmp.ne.s32.totalorder %s962_s20, 0 }
  0x59   : > { %672 = dma.done.wait (%p974_p13), [#allocation7], 512  }
  0x5a   : > { %674 = vsyncadd (%p974_p13), [#allocation7], 4294966784  ;;  %vm256_vm0 = vcmask 785408   ;;  %v707_v0 = vmov 0.0   ;;  %vm708_vm1 = vmmov 0   ;;  %v261_v1 = vld [vmem:[#allocation6] sm:$0xff] }
  0x5b   : > { %257 = vst.msk [vmem:[#allocation2] sm:$0xff] %vm256_vm0, %v707_v0  ;;  %472 = vmatprep.subr.bf16.mxu0 %v707_v0  ;;  %476 = vmatprep.mubr.msk.bf16.mxu0 %vm708_vm1, %v707_v0  ;;  %v262_v2 = vld [vmem:[#allocation6 + $0x8] sm:$0xff]  ;;  %v263_v3 = vld [vmem:[#allocation6 + $0x10] sm:$0xff]  ;;  %v264_v5 = vld [vmem:[#allocation6 + $0x18] sm:$0xff]  ;;  %vm267_vm2 = vcmask 261120   ;;  %s466_s24 = sshll.u32 %s693_s15, 7 }
  0x5c   : > { %v265_v4 = vpack.c.bf16 %v262_v2, %v261_v1  ;;  %v266_v6 = vpack.c.bf16 %v264_v5, %v263_v3  ;;  %v259_v7 = vld [vmem:[%s217_s4] sm:$0xff]  ;;  %v464_v15 = vld [vmem:[%s956_s2] ss:$0 sm:$0xff]  ;;  %s246_s9 = scalar_lea.vmem [#allocation8], %s460_s25  ;;  %s904_s29 = scalar_lea.hbm %s957_s3, %s466_s24 }
  0x5d   : > { %v260_v8 = vpack.c.bf16 %v259_v7, %v259_v7  ;;  %s342_s10 = sshll.u32 %s246_s9, 4  ;;  %s328_s6 = scalar_lea.sflag [#allocation5], %s879_s19  ;;  %s906_s10 = int_to_ptr.vmem [resolvable:$true] %s342_s10 }
  0x5e   : > { %473 = vmatpush3.bf16.msra.mxu0 %v265_v4  ;;  %s615_s26 = scalar_lea.vmem %s906_s10, 128  ;;  %s709_s15 = smov [#allocation8]  }
  0x5f   : > { %474 = vmatprep.subr.bf16.mxu0 %v707_v0  ;;  %p616_p4 = scmp.ne.s32.totalorder %s906_s10, %s615_s26  ;;  %s619_s7 = sshll.u32 %s709_s15, 4  ;;  %s620_s7 = int_to_ptr.vmem [resolvable:$false] %s619_s7 }
  0x60   : > { %s621_s8 = scalar_lea.vmem %s620_s7, 256  ;;  %p622_p12 = scmp.lt.s32.totalorder %s906_s10, %s620_s7 }
  0x61   : > { %p617_p6 = pnand %p616_p4, %p826_p10  ;;  %p623_p11 = scmp.lt.s32.totalorder %s621_s8, %s615_s26 }
  0x62   : > { %475 = vmatpush3.bf16.msra.mxu0 %v266_v6  ;;  %v258_v9 = vld [vmem:[#allocation2] sm:$0xff] }
  0x63   : > { %p618_p8 = pneg %p617_p6  ;;  %p624_p0 = por %p623_p11, %p622_p12 }
  0x65   : > { %477 = vmatmul.mubr.msk.bf16.vlgmr.msra.gmra.mrb[0].mxu0 %vm267_vm2, %v260_v8  ;;  %p625_p5 = pnand %p624_p0, %p618_p8 }
 0x138   : > { %v305_v10 = vpop.f32.mrb[0].mxu0 }
 0x139   : > { %v311_v11 = vadd.f32 %v305_v10, %v258_v9  ;;  %v478_v12 = vpop.f32.mrb[1].mxu0 }
 0x13a   : > { %v308_v13 = vpop.f32.mrb[2].mxu0 }
 0x13b   : > { %313 = vst.msk [vmem:[#allocation2] sm:$0xff] %vm256_vm0, %v311_v11  ;;  %v479_v14 = vpop.f32.mrb[3].mxu0 }
 0x142   : > { %v317_v16 = vld [vmem:[#allocation2] sm:$0xff] }
 0x143   : > { %v325_v17 = vadd.f32 %v464_v15, %v317_v16 }
 0x145   : > { %326 = vst.msk [vmem:[%s246_s9] sm:$0xff] %vm256_vm0, %v325_v17 }
 0x146   : > { %628 = shalt.err (!%p625_p5)
}
 0x147   : > { %s629_s21 = scalar_lea.hbm %s904_s29, 128  ;;  %s633_s27 = scalar_lea.hbm %s957_s3, 256 }
 0x148   : > { %p630_p9 = scmp.ne.s32.totalorder %s904_s29, %s629_s21  ;;  %p634_p7 = scmp.lt.u32.totalorder %s904_s29, %s957_s3 }
 0x149   : > { %p635_p3 = scmp.lt.u32.totalorder %s633_s27, %s629_s21  ;;  %p637_p4 = scmp.lt.u32.totalorder %s629_s21, %s904_s29 }
 0x14a   : > { %p631_p1 = pnand %p630_p9, %p826_p10 }
 0x14b   : > { %p636_p13 = por %p635_p3, %p634_p7 }
 0x14c   : > { %p632_p2 = pneg %p631_p1 }
 0x14d   : > { %p638_p6 = por %p637_p4, %p636_p13 }
 0x14f   : > { %p639_p8 = pnand %p638_p6, %p632_p2 }
 0x151   : > { %642 = shalt.err (!%p639_p8)
}
 0x152   : > { %486 = dma.vmem_to_hbm [thread:$0]  (%p826_p10), %s906_s10, 128, %s904_s29, %s328_s6  }
 0x153 PF: > { %s354_s22 = sand.u32 1, %s681_s12   ;;  %p975_p12 = scmp.ne.s32.totalorder %s965_s23, 0 }
 0x154   : > { %p976_p11 = scmp.ge.s32.totalorder %s701_s17, 2  ;;  %s355_s24 = scalar_lea.sflag [#allocation5], %s354_s22 }
 0x156   : > { %p497_p0 = pnand %p976_p11, %p975_p12 }
 0x158   : > { %676 = dma.done.wait (!%p497_p0), %s355_s24, 128  }
 0x159   : > { %678 = vsyncadd (!%p497_p0), %s355_s24, 4294967168  ;;  %s20_s17 = sadd.s32 1, %s701_s17   ;;  %s977_s12 = smov %s685_s13 }
 0x15a   : > { %p17_p5 = scmp.ge.s32.totalorder %s20_s17, 4   ;;  %s978_s13 = smov %s689_s14 }
 0x15b   : > { %s979_s14 = smov %s835_s5  ;;  %s980_s15 = smov %s697_s16 }
 0x15c   : > { %s981_s16 = smov %s983_s28  ;;  %19 = sbr.rel (!%p17_p5) target bundleno = 7 (0x7), region = 93 }
 0x163   :  { %360 = vsyncpa [#allocation4], 1 }
 0x164   :  { %362 = vsyncpa [#allocation4 + $0x1], 1 }
 0x165   :  { %363 = vsyncpa [#allocation7], 1 }
 0x166   :  { %364 = vsyncpa [#allocation5], 1 }
 0x167   :  { %366 = vsyncpa [#allocation5 + $0x1], 1 }

</bundles_post_ra>
